<compile_context>
chip_gen: v7x
topology: tpu7x:2x2x1
jax: 0.10.0
libtpu: 0.0.40
codegen_flags: <defaults>
</compile_context>

<pallas_src>
import jax
import jax.numpy as jnp
from jax import lax
from jax.experimental import pallas as pl
from jax.experimental.pallas import tpu as pltpu


# ----------------------------------------------------------------------------
# Fused Pallas kernel: one ResidualBlock1d layer per grid step (grid = (B, L))
# ----------------------------------------------------------------------------
def make_kernel(F, H, S, T, K, L, num_layers, layer_dilations, eps, Tc,
                mxu_dtype, approx_recip):
    n_chunks = T // Tc

    def kernel(x_ref, tri_ref, w_in_ref, b_in_ref, bog_ref, w_cat_ref, b_cat_ref,
               out_ref, x_scr, skip_scr, xcat_scr):
        lid = pl.program_id(1)                     # global layer index 0..L-1

        # ---- reset per-batch-element state at the first layer ----
        @pl.when(lid == 0)
        def _init():
            x_scr[...] = x_ref[0]                  # (F, T) f32 residual stream
            skip_scr[...] = jnp.zeros_like(skip_scr)

        x = x_scr[...]                             # (F, T) f32

        # ---- 1x1 bottleneck conv (channel matmul on the MXU) ----
        h = jnp.dot(w_in_ref[0], x.astype(mxu_dtype),
                    preferred_element_type=jnp.float32) + b_in_ref[0]        # (H, T) f32

        # ---- causal cumulative LayerNorm (cLN); stats stay in f32 ----
        # step sums and sums-of-squares merged into one (2, T) matrix.
        stats = jnp.concatenate(
            [jnp.sum(h, axis=0, keepdims=True),
             jnp.sum(h * h, axis=0, keepdims=True)], axis=0)                 # (2, T)
        tri = tri_ref[...]                                                   # (Tc, Tc)
        carry = jnp.zeros((2, 1), jnp.float32)
        chunks = []
        for c in range(n_chunks):                  # chunked prefix sum, no (T,T) matrix
            sc = stats[:, c * Tc:(c + 1) * Tc]
            cc = jnp.dot(sc, tri, preferred_element_type=jnp.float32) + carry
            carry = cc[:, Tc - 1:Tc]               # running totals at chunk end
            chunks.append(cc)
        cums = chunks[0] if n_chunks == 1 else jnp.concatenate(chunks, axis=1)

        cnt = (lax.broadcasted_iota(jnp.int32, (1, T), 1) + 1).astype(jnp.float32) * float(H)
        inv_cnt = 1.0 / cnt
        mean = cums[0:1] * inv_cnt
        var = jnp.maximum(cums[1:2] * inv_cnt - mean * mean, 0.0)
        denom = jnp.sqrt(var) + eps
        if approx_recip:                           # EUP slot; opt-in (error compounds over L)
            inv_std = pl.reciprocal(denom, approx=True)
        else:
            inv_std = 1.0 / denom
        # gamma is folded into w_cat; bog = beta / gamma.
        hn_m = ((h - mean) * inv_std + bog_ref[0]).astype(mxu_dtype)         # (H, T)

        # ---- causal dilated conv: K shifted taps into one persistent scratch ----
        # Tap K-1 has offset 0 for every dilation -> written once, lane-aligned.
        xcat_scr[(K - 1) * H:, :] = hn_m
        lyr = lid % num_layers                      # layer-in-block -> dilation 2**lyr
        for j, d in enumerate(layer_dilations):     # static dilation per branch
            @pl.when(lyr == j)
            def _taps(d=d):
                for k in range(K - 1):
                    off = (K - 1 - k) * d
                    # full row is rewritten every layer -> no stale-data invariant needed
                    xcat_scr[k * H:(k + 1) * H, :off] = jnp.zeros((H, off), mxu_dtype)
                    xcat_scr[k * H:(k + 1) * H, off:] = hn_m[:, :T - off]

        # ---- skip + output heads fused in ONE MXU matmul ----
        y = jnp.dot(w_cat_ref[0], xcat_scr[...],
                    preferred_element_type=jnp.float32) + b_cat_ref[0]       # (S+F, T)

        skip_scr[...] = skip_scr[...] + y[:S]
        # The (single) non-dual last layer has zero output-head rows and zero bias,
        # so this residual update is an exact no-op there.
        x_scr[...] = y[S:] + x

        @pl.when(lid == L - 1)
        def _finalize():
            out_ref[0] = skip_scr[...]

    return kernel


# ----------------------------------------------------------------------------
# Wrapper: pack per-layer weights, build small tri, one pallas_call over (B, L)
# ----------------------------------------------------------------------------
def time_dilated_conv_net(x, params, eps=1e-8, mxu_dtype=jnp.float32,
                          approx_reciprocal=False, time_chunk=256):
    """Full TimeDilatedConvNet forward.  x: (B, F, T) float32 -> (B, S, T) float32.

    mxu_dtype=jnp.bfloat16 runs the conv matmuls (and the tap scratch) in bf16
    (recommended on v6e/v7x at production sizes); cLN statistics stay in f32.
    """
    B, F, T = x.shape
    num_blocks = len(params)
    num_layers = len(params[0])
    assert all(len(b) == num_layers for b in params)
    layers = [p for block in params for p in block]
    L = num_blocks * num_layers
    K, S, H = layers[0]["w_skip"].shape
    layer_dilations = tuple(2 ** j for j in range(num_layers))   # dilated=True config
    assert (K - 1) * max(layer_dilations) < T, "causal pad must be shorter than T"
    Tc = time_chunk if (T % time_chunk == 0) else T              # cLN prefix-sum chunk

    # ---- stack per-layer weights (streamed layer-by-layer via BlockSpec) ----
    w_in_all = jnp.stack([p["w_in"] for p in layers]).astype(mxu_dtype)      # (L, H, F)
    b_in_all = jnp.stack([p["b_in"] for p in layers])                        # (L, H, 1)
    # fold gamma into the conv weights (exact: per-channel, time-invariant, and the
    # causal zero-padding stays zero); requires gamma != 0 (module init: gamma = 1).
    bog_all = jnp.stack([p["beta"] / p["gamma"] for p in layers])            # (L, H, 1)

    w_cat_list, b_cat_list = [], []
    for p in layers:
        g = p["gamma"][:, 0]                                                 # (H,)
        top = jnp.concatenate([p["w_skip"][k] for k in range(K)], axis=1)    # (S, K*H)
        if "w_out" in p:
            bot = jnp.concatenate([p["w_out"][k] for k in range(K)], axis=1) # (F, K*H)
            bb = p["b_out"]
        else:
            # single non-dual last layer: zero rows keep the streamed block shape
            # uniform; the residual update becomes an exact no-op.
            bot = jnp.zeros((F, K * H), jnp.float32)
            bb = jnp.zeros((F, 1), jnp.float32)
        w = jnp.concatenate([top, bot], axis=0) * jnp.tile(g, K)[None, :]    # gamma fold
        w_cat_list.append(w)
        b_cat_list.append(jnp.concatenate([p["b_skip"], bb], axis=0))
    w_cat_all = jnp.stack(w_cat_list).astype(mxu_dtype)                      # (L, S+F, K*H)
    b_cat_all = jnp.stack(b_cat_list)                                        # (L, S+F, 1)

    # small lower-triangular ones matrix: tri[tau, t] = (tau <= t)
    idx = jnp.arange(Tc)
    tri = (idx[:, None] <= idx[None, :]).astype(jnp.float32)                 # (Tc, Tc)

    kernel = make_kernel(F, H, S, T, K, L, num_layers, layer_dilations,
                         eps, Tc, mxu_dtype, approx_reciprocal)

    fn = pl.pallas_call(
        kernel,
        out_shape=jax.ShapeDtypeStruct((B, S, T), jnp.float32),
        grid=(B, L),
        in_specs=[
            pl.BlockSpec((1, F, T), lambda b, l: (b, 0, 0)),                 # x (per-batch)
            pl.BlockSpec((Tc, Tc), lambda b, l: (0, 0)),                     # tri (constant)
            pl.BlockSpec((1, H, F), lambda b, l: (l, 0, 0)),                 # w_in  (streamed)
            pl.BlockSpec((1, H, 1), lambda b, l: (l, 0, 0)),                 # b_in
            pl.BlockSpec((1, H, 1), lambda b, l: (l, 0, 0)),                 # beta/gamma
            pl.BlockSpec((1, S + F, K * H), lambda b, l: (l, 0, 0)),         # w_cat
            pl.BlockSpec((1, S + F, 1), lambda b, l: (l, 0, 0)),             # b_cat
        ],
        out_specs=pl.BlockSpec((1, S, T), lambda b, l: (b, 0, 0)),
        scratch_shapes=[
            pltpu.VMEM((F, T), jnp.float32),        # residual stream (persists over l)
            pltpu.VMEM((S, T), jnp.float32),        # skip accumulator (persists over l)
            pltpu.VMEM((K * H, T), mxu_dtype),      # dilated-conv taps, reused every layer
        ],
        compiler_params=pltpu.CompilerParams(
            dimension_semantics=("parallel", "arbitrary"),
            vmem_limit_bytes=48 * 1024 * 1024,      # explicit; re-size per generation
        ),
    )
    return fn(x, tri, w_in_all, b_in_all, bog_all, w_cat_all, b_cat_all)


# ----------------------------------------------------------------------------
# Pure-JAX reference (independent formulation, for verification)
# ----------------------------------------------------------------------------
def _residual_block_ref(x, p, dilation, dual_head, eps):
    B, F, T = x.shape
    K = p["w_skip"].shape[0]
    H = p["w_in"].shape[0]
    hi = jnp.einsum("hf,bft->bht", p["w_in"], x,
                    precision=lax.Precision.HIGHEST) + p["b_in"][None]
    step_sum = jnp.sum(hi, axis=1)
    step_sq = jnp.sum(hi * hi, axis=1)
    cum_sum = jnp.cumsum(step_sum, axis=1)
    cum_sq = jnp.cumsum(step_sq, axis=1)
    cnt = jnp.arange(1, T + 1, dtype=jnp.float32) * H
    mean = cum_sum / cnt
    var = jnp.maximum(cum_sq / cnt - mean ** 2, 0.0)
    hn = (hi - mean[:, None, :]) / (jnp.sqrt(var)[:, None, :] + eps) \
        * p["gamma"][None] + p["beta"][None]
    pad = (K - 1) * dilation
    hp = jnp.pad(hn, ((0, 0), (0, 0), (pad, 0)))
    skip = p["b_skip"][None] + sum(
        jnp.einsum("sh,bht->bst", p["w_skip"][k],
                   hp[:, :, k * dilation: k * dilation + T],
                   precision=lax.Precision.HIGHEST)
        for k in range(K))
    out = None
    if dual_head:
        out = p["b_out"][None] + sum(
            jnp.einsum("fh,bht->bft", p["w_out"][k],
                       hp[:, :, k * dilation: k * dilation + T],
                       precision=lax.Precision.HIGHEST)
            for k in range(K)) + x
    return out, skip


def time_dilated_conv_net_ref(x, params, eps=1e-8):
    skip_total = None
    for block_params in params:
        block_skip = None
        for l, p in enumerate(block_params):
            out, skip = _residual_block_ref(x, p, 2 ** l, "w_out" in p, eps)
            block_skip = skip if block_skip is None else block_skip + skip
            if out is not None:
                x = out
        skip_total = block_skip if skip_total is None else skip_total + block_skip
    return skip_total


# ----------------------------------------------------------------------------
# Deterministic parameter init (synthetic; shapes follow the nn.Module __init__)
# ----------------------------------------------------------------------------
def init_params(key, F, H, S, K, num_blocks, num_layers):
    params = []
    for b in range(num_blocks):
        block = []
        for l in range(num_layers):
            dual_head = not (b == num_blocks - 1 and l == num_layers - 1)
            key, k0, k1, k2, k3, k4, k5 = jax.random.split(key, 7)
            p = dict(
                w_in=0.1 * jax.random.normal(k0, (H, F), jnp.float32),
                b_in=0.1 * jax.random.normal(k1, (H, 1), jnp.float32),
                gamma=jnp.ones((H, 1), jnp.float32),   # cLN reset: gamma=1
                beta=jnp.zeros((H, 1), jnp.float32),   # cLN reset: beta=0
                # PyTorch Conv1d weight (S, H, K) stored pre-transposed as (K, S, H)
                w_skip=0.1 * jax.random.normal(k2, (K, S, H), jnp.float32),
                b_skip=0.1 * jax.random.normal(k3, (S, 1), jnp.float32),
            )
            if dual_head:
                p["w_out"] = 0.1 * jax.random.normal(k4, (K, F, H), jnp.float32)
                p["b_out"] = 0.1 * jax.random.normal(k5, (F, 1), jnp.float32)
            block.append(p)
        params.append(block)
    return params


if __name__ == "__main__":
    # Small shapes: batch=2, num_features=8, hidden=16, skip=16, T=16,
    # kernel_size=3, num_blocks=2, num_layers=3  (6 streamed layers total).
    B, F, H, S, T, K = 2, 8, 16, 16, 16, 3
    num_blocks, num_layers = 2, 3

    key = jax.random.PRNGKey(0)
    key, xkey = jax.random.split(key)
    x = jax.random.normal(xkey, (B, F, T), jnp.float32)
    params = init_params(key, F, H, S, K, num_blocks, num_layers)

    # f32 MXU + exact reciprocal here for a tight check against the f32 reference;
    # pass mxu_dtype=jnp.bfloat16 (and approx_reciprocal=True) on v6e/v7x at size.
    out = time_dilated_conv_net(x, params, mxu_dtype=jnp.float32,
                                approx_reciprocal=False)
    out = jax.block_until_ready(out)

    ref = time_dilated_conv_net_ref(x, params)
    max_err = float(jnp.max(jnp.abs(out - ref)))
    assert out.shape == (B, S, T), out.shape
    assert bool(jnp.all(jnp.isfinite(out)))
    # typical max abs err with exact reciprocal is ~1e-5; margin covers MXU precision
    assert max_err < 5e-2, f"mismatch vs reference, max abs err = {max_err}"

    print("KERNEL_OK")
</pallas_src>

<mosaic_0001>
module attributes {stable_mosaic.version = 11 : i64} {
  func.func @kernel(%arg0: i32, %arg1: i32, %arg2: memref<1x8x16xf32, #tpu.memory_space<vmem>>, %arg3: memref<16x16xf32, #tpu.memory_space<vmem>>, %arg4: memref<1x16x8xf32, #tpu.memory_space<vmem>>, %arg5: memref<1x16x1xf32, #tpu.memory_space<vmem>>, %arg6: memref<1x16x1xf32, #tpu.memory_space<vmem>>, %arg7: memref<1x24x48xf32, #tpu.memory_space<vmem>>, %arg8: memref<1x24x1xf32, #tpu.memory_space<vmem>>, %arg9: memref<1x16x16xf32, #tpu.memory_space<vmem>>, %arg10: memref<8x16xf32, #tpu.memory_space<vmem>>, %arg11: memref<16x16xf32, #tpu.memory_space<vmem>>, %arg12: memref<48x16xf32, #tpu.memory_space<vmem>>) attributes {dimension_semantics = [#tpu.dimension_semantics<parallel>, #tpu.dimension_semantics<arbitrary>], iteration_bounds = array<i64: 2, 6>, scalar_prefetch = 0 : i64, scratch_operands = 3 : i64, tpu.core_type = #tpu.core_type<tc>, window_params = [{transform_indices = @transform_0, window_bounds = array<i64: 1, 8, 16>}, {pipeline_mode = #tpu.pipeline_mode<synchronous>, transform_indices = @transform_1, window_bounds = array<i64: 16, 16>}, {transform_indices = @transform_2, window_bounds = array<i64: 1, 16, 8>}, {transform_indices = @transform_3, window_bounds = array<i64: 1, 16, 1>}, {transform_indices = @transform_4, window_bounds = array<i64: 1, 16, 1>}, {transform_indices = @transform_5, window_bounds = array<i64: 1, 24, 48>}, {transform_indices = @transform_6, window_bounds = array<i64: 1, 24, 1>}, {transform_indices = @transform_7, window_bounds = array<i64: 1, 16, 16>}]} {
    %c0_i32 = arith.constant 0 : i32
    %0 = arith.cmpi eq, %arg1, %c0_i32 : i32
    %1 = arith.extui %0 : i1 to i32
    %c0_i32_0 = arith.constant 0 : i32
    %2 = arith.cmpi ne, %1, %c0_i32_0 : i32
    scf.if %2 {
      %c0_49 = arith.constant 0 : index
      %c0_50 = arith.constant 0 : index
      %c0_51 = arith.constant 0 : index
      %89 = vector.load %arg2[%c0_49, %c0_50, %c0_51] : memref<1x8x16xf32, #tpu.memory_space<vmem>>, vector<1x8x16xf32>
      %90 = vector.shape_cast %89 : vector<1x8x16xf32> to vector<8x16xf32>
      %c0_52 = arith.constant 0 : index
      %c0_53 = arith.constant 0 : index
      %91 = vector.load %arg10[%c0_52, %c0_53] : memref<8x16xf32, #tpu.memory_space<vmem>>, vector<8x16xf32>
      tpu.vector_store %arg10[%c0_52, %c0_53], %90 {strides = array<i32>} : memref<8x16xf32, #tpu.memory_space<vmem>>, vector<8x16xf32>,
      %cst_54 = arith.constant 0.000000e+00 : f32
      %92 = vector.broadcast %cst_54 : f32 to vector<16x16xf32>
      %c0_55 = arith.constant 0 : index
      %c0_56 = arith.constant 0 : index
      %93 = vector.load %arg11[%c0_55, %c0_56] : memref<16x16xf32, #tpu.memory_space<vmem>>, vector<16x16xf32>
      tpu.vector_store %arg11[%c0_55, %c0_56], %92 {strides = array<i32>} : memref<16x16xf32, #tpu.memory_space<vmem>>, vector<16x16xf32>,
    } else {
    }
    %c0 = arith.constant 0 : index
    %c0_1 = arith.constant 0 : index
    %3 = vector.load %arg10[%c0, %c0_1] : memref<8x16xf32, #tpu.memory_space<vmem>>, vector<8x16xf32>
    %c0_2 = arith.constant 0 : index
    %c0_3 = arith.constant 0 : index
    %c0_4 = arith.constant 0 : index
    %4 = vector.load %arg4[%c0_2, %c0_3, %c0_4] : memref<1x16x8xf32, #tpu.memory_space<vmem>>, vector<1x16x8xf32>
    %5 = vector.shape_cast %4 : vector<1x16x8xf32> to vector<16x8xf32>
    %cst = arith.constant dense<0.000000e+00> : vector<16x16xf32>
    %6 = tpu.matmul %5, %3, %cst {dimension_numbers = #tpu.dot_dimension_numbers<[1], [0], [0], [1], [0, 0, 1, 1], [], []>} : vector<16x8xf32>, vector<8x16xf32>, vector<16x16xf32> -> vector<16x16xf32>
    %c0_5 = arith.constant 0 : index
    %c0_6 = arith.constant 0 : index
    %c0_7 = arith.constant 0 : index
    %7 = vector.load %arg5[%c0_5, %c0_6, %c0_7] : memref<1x16x1xf32, #tpu.memory_space<vmem>>, vector<1x16x1xf32>
    %8 = vector.shape_cast %7 : vector<1x16x1xf32> to vector<16x1xf32>
    %9 = vector.broadcast %8 : vector<16x1xf32> to vector<16x16xf32>
    %10 = arith.addf %6, %9 : vector<16x16xf32>
    %cst_8 = arith.constant dense<0.000000e+00> : vector<16xf32>
    %11 = vector.multi_reduction <add>, %10, %cst_8 [0] : vector<16x16xf32> to vector<16xf32>
    %12 = vector.shape_cast %11 : vector<16xf32> to vector<1x16xf32>
    %13 = arith.mulf %10, %10 : vector<16x16xf32>
    %cst_9 = arith.constant dense<0.000000e+00> : vector<16xf32>
    %14 = vector.multi_reduction <add>, %13, %cst_9 [0] : vector<16x16xf32> to vector<16xf32>
    %15 = vector.shape_cast %14 : vector<16xf32> to vector<1x16xf32>
    %16 = tpu.concatenate %12, %15 in 0 : vector<1x16xf32>, vector<1x16xf32> -> vector<2x16xf32>
    %c0_10 = arith.constant 0 : index
    %c0_11 = arith.constant 0 : index
    %17 = vector.load %arg3[%c0_10, %c0_11] : memref<16x16xf32, #tpu.memory_space<vmem>>, vector<16x16xf32>
    %cst_12 = arith.constant 0.000000e+00 : f32
    %18 = vector.broadcast %cst_12 : f32 to vector<2x1xf32>
    %cst_13 = arith.constant dense<0.000000e+00> : vector<2x16xf32>
    %19 = tpu.matmul %16, %17, %cst_13 {dimension_numbers = #tpu.dot_dimension_numbers<[1], [0], [0], [1], [0, 0, 1, 1], [], []>} : vector<2x16xf32>, vector<16x16xf32>, vector<2x16xf32> -> vector<2x16xf32>
    %20 = vector.broadcast %18 : vector<2x1xf32> to vector<2x16xf32>
    %21 = arith.addf %19, %20 : vector<2x16xf32>
    %22 = tpu.iota {dimensions = array<i32: 1>} : vector<1x16xi32>
    %c1_i32 = arith.constant 1 : i32
    %23 = vector.broadcast %c1_i32 : i32 to vector<1x16xi32>
    %24 = arith.addi %22, %23 : vector<1x16xi32>
    %25 = arith.sitofp %24 : vector<1x16xi32> to vector<1x16xf32>
    %cst_14 = arith.constant 1.600000e+01 : f32
    %26 = vector.broadcast %cst_14 : f32 to vector<1x16xf32>
    %27 = arith.mulf %25, %26 : vector<1x16xf32>
    %cst_15 = arith.constant 1.000000e+00 : f32
    %28 = vector.broadcast %cst_15 : f32 to vector<1x16xf32>
    %29 = arith.divf %28, %27 : vector<1x16xf32>
    %30 = vector.extract_strided_slice %21 {offsets = [0, 0], sizes = [1, 16], strides = [1, 1]} : vector<2x16xf32> to vector<1x16xf32>
    %31 = arith.mulf %30, %29 : vector<1x16xf32>
    %32 = vector.extract_strided_slice %21 {offsets = [1, 0], sizes = [1, 16], strides = [1, 1]} : vector<2x16xf32> to vector<1x16xf32>
    %33 = arith.mulf %32, %29 : vector<1x16xf32>
    %34 = arith.mulf %31, %31 : vector<1x16xf32>
    %35 = arith.subf %33, %34 : vector<1x16xf32>
    %cst_16 = arith.constant 0.000000e+00 : f32
    %36 = vector.broadcast %cst_16 : f32 to vector<1x16xf32>
    %37 = arith.maximumf %35, %36 : vector<1x16xf32>
    %38 = math.sqrt %37 : vector<1x16xf32>
    %cst_17 = arith.constant 9.99999993E-9 : f32
    %39 = vector.broadcast %cst_17 : f32 to vector<1x16xf32>
    %40 = arith.addf %38, %39 : vector<1x16xf32>
    %cst_18 = arith.constant 1.000000e+00 : f32
    %41 = vector.broadcast %cst_18 : f32 to vector<1x16xf32>
    %42 = arith.divf %41, %40 : vector<1x16xf32>
    %43 = vector.broadcast %31 : vector<1x16xf32> to vector<16x16xf32>
    %44 = arith.subf %10, %43 : vector<16x16xf32>
    %45 = vector.broadcast %42 : vector<1x16xf32> to vector<16x16xf32>
    %46 = arith.mulf %44, %45 : vector<16x16xf32>
    %c0_19 = arith.constant 0 : index
    %c0_20 = arith.constant 0 : index
    %c0_21 = arith.constant 0 : index
    %47 = vector.load %arg6[%c0_19, %c0_20, %c0_21] : memref<1x16x1xf32, #tpu.memory_space<vmem>>, vector<1x16x1xf32>
    %48 = vector.shape_cast %47 : vector<1x16x1xf32> to vector<16x1xf32>
    %49 = vector.broadcast %48 : vector<16x1xf32> to vector<16x16xf32>
    %50 = arith.addf %46, %49 : vector<16x16xf32>
    %c32 = arith.constant 32 : index
    %c0_22 = arith.constant 0 : index
    %51 = vector.load %arg12[%c32, %c0_22] : memref<48x16xf32, #tpu.memory_space<vmem>>, vector<16x16xf32>
    tpu.vector_store %arg12[%c32, %c0_22], %50 {strides = array<i32>} : memref<48x16xf32, #tpu.memory_space<vmem>>, vector<16x16xf32>,
    %c3_i32 = arith.constant 3 : i32
    %c0_i32_23 = arith.constant 0 : i32
    %52 = arith.cmpi eq, %c3_i32, %c0_i32_23 : i32
    %c1_i32_24 = arith.constant 1 : i32
    %53 = arith.select %52, %c1_i32_24, %c3_i32 : i32
    %54 = arith.remsi %arg1, %53 : i32
    %c0_i32_25 = arith.constant 0 : i32
    %55 = arith.cmpi ne, %54, %c0_i32_25 : i32
    %c0_i32_26 = arith.constant 0 : i32
    %56 = arith.cmpi slt, %54, %c0_i32_26 : i32
    %c0_i32_27 = arith.constant 0 : i32
    %57 = arith.cmpi slt, %53, %c0_i32_27 : i32
    %58 = arith.xori %56, %57 : i1
    %59 = arith.andi %58, %55 : i1
    %60 = arith.addi %54, %53 : i32
    %61 = arith.select %59, %60, %54 : i32
    %c0_i32_28 = arith.constant 0 : i32
    %62 = arith.cmpi eq, %61, %c0_i32_28 : i32
    %63 = arith.extui %62 : i1 to i32
    %c0_i32_29 = arith.constant 0 : i32
    %64 = arith.cmpi ne, %63, %c0_i32_29 : i32
    scf.if %64 {
      %cst_49 = arith.constant 0.000000e+00 : f32
      %89 = vector.broadcast %cst_49 : f32 to vector<16x2xf32>
      %c0_50 = arith.constant 0 : index
      %c0_51 = arith.constant 0 : index
      %90 = vector.load %arg12[%c0_50, %c0_51] : memref<48x16xf32, #tpu.memory_space<vmem>>, vector<16x2xf32>
      tpu.vector_store %arg12[%c0_50, %c0_51], %89 {strides = array<i32>} : memref<48x16xf32, #tpu.memory_space<vmem>>, vector<16x2xf32>,
      %91 = vector.extract_strided_slice %50 {offsets = [0, 0], sizes = [16, 14], strides = [1, 1]} : vector<16x16xf32> to vector<16x14xf32>
      %c0_52 = arith.constant 0 : index
      %c2 = arith.constant 2 : index
      %92 = vector.load %arg12[%c0_52, %c2] : memref<48x16xf32, #tpu.memory_space<vmem>>, vector<16x14xf32>
      tpu.vector_store %arg12[%c0_52, %c2], %91 {strides = array<i32>} : memref<48x16xf32, #tpu.memory_space<vmem>>, vector<16x14xf32>,
      %cst_53 = arith.constant 0.000000e+00 : f32
      %93 = vector.broadcast %cst_53 : f32 to vector<16x1xf32>
      %c16 = arith.constant 16 : index
      %c0_54 = arith.constant 0 : index
      %94 = vector.load %arg12[%c16, %c0_54] : memref<48x16xf32, #tpu.memory_space<vmem>>, vector<16x1xf32>
      tpu.vector_store %arg12[%c16, %c0_54], %93 {strides = array<i32>} : memref<48x16xf32, #tpu.memory_space<vmem>>, vector<16x1xf32>,
      %95 = vector.extract_strided_slice %50 {offsets = [0, 0], sizes = [16, 15], strides = [1, 1]} : vector<16x16xf32> to vector<16x15xf32>
      %c16_55 = arith.constant 16 : index
      %c1 = arith.constant 1 : index
      %96 = vector.load %arg12[%c16_55, %c1] : memref<48x16xf32, #tpu.memory_space<vmem>>, vector<16x15xf32>
      tpu.vector_store %arg12[%c16_55, %c1], %95 {strides = array<i32>} : memref<48x16xf32, #tpu.memory_space<vmem>>, vector<16x15xf32>,
    } else {
    }
    %c1_i32_30 = arith.constant 1 : i32
    %65 = arith.cmpi eq, %61, %c1_i32_30 : i32
    %66 = arith.extui %65 : i1 to i32
    %c0_i32_31 = arith.constant 0 : i32
    %67 = arith.cmpi ne, %66, %c0_i32_31 : i32
    scf.if %67 {
      %cst_49 = arith.constant 0.000000e+00 : f32
      %89 = vector.broadcast %cst_49 : f32 to vector<16x4xf32>
      %c0_50 = arith.constant 0 : index
      %c0_51 = arith.constant 0 : index
      %90 = vector.load %arg12[%c0_50, %c0_51] : memref<48x16xf32, #tpu.memory_space<vmem>>, vector<16x4xf32>
      tpu.vector_store %arg12[%c0_50, %c0_51], %89 {strides = array<i32>} : memref<48x16xf32, #tpu.memory_space<vmem>>, vector<16x4xf32>,
      %91 = vector.extract_strided_slice %50 {offsets = [0, 0], sizes = [16, 12], strides = [1, 1]} : vector<16x16xf32> to vector<16x12xf32>
      %c0_52 = arith.constant 0 : index
      %c4 = arith.constant 4 : index
      %92 = vector.load %arg12[%c0_52, %c4] : memref<48x16xf32, #tpu.memory_space<vmem>>, vector<16x12xf32>
      tpu.vector_store %arg12[%c0_52, %c4], %91 {strides = array<i32>} : memref<48x16xf32, #tpu.memory_space<vmem>>, vector<16x12xf32>,
      %cst_53 = arith.constant 0.000000e+00 : f32
      %93 = vector.broadcast %cst_53 : f32 to vector<16x2xf32>
      %c16 = arith.constant 16 : index
      %c0_54 = arith.constant 0 : index
      %94 = vector.load %arg12[%c16, %c0_54] : memref<48x16xf32, #tpu.memory_space<vmem>>, vector<16x2xf32>
      tpu.vector_store %arg12[%c16, %c0_54], %93 {strides = array<i32>} : memref<48x16xf32, #tpu.memory_space<vmem>>, vector<16x2xf32>,
      %95 = vector.extract_strided_slice %50 {offsets = [0, 0], sizes = [16, 14], strides = [1, 1]} : vector<16x16xf32> to vector<16x14xf32>
      %c16_55 = arith.constant 16 : index
      %c2 = arith.constant 2 : index
      %96 = vector.load %arg12[%c16_55, %c2] : memref<48x16xf32, #tpu.memory_space<vmem>>, vector<16x14xf32>
      tpu.vector_store %arg12[%c16_55, %c2], %95 {strides = array<i32>} : memref<48x16xf32, #tpu.memory_space<vmem>>, vector<16x14xf32>,
    } else {
    }
    %c2_i32 = arith.constant 2 : i32
    %68 = arith.cmpi eq, %61, %c2_i32 : i32
    %69 = arith.extui %68 : i1 to i32
    %c0_i32_32 = arith.constant 0 : i32
    %70 = arith.cmpi ne, %69, %c0_i32_32 : i32
    scf.if %70 {
      %cst_49 = arith.constant 0.000000e+00 : f32
      %89 = vector.broadcast %cst_49 : f32 to vector<16x8xf32>
      %c0_50 = arith.constant 0 : index
      %c0_51 = arith.constant 0 : index
      %90 = vector.load %arg12[%c0_50, %c0_51] : memref<48x16xf32, #tpu.memory_space<vmem>>, vector<16x8xf32>
      tpu.vector_store %arg12[%c0_50, %c0_51], %89 {strides = array<i32>} : memref<48x16xf32, #tpu.memory_space<vmem>>, vector<16x8xf32>,
      %91 = vector.extract_strided_slice %50 {offsets = [0, 0], sizes = [16, 8], strides = [1, 1]} : vector<16x16xf32> to vector<16x8xf32>
      %c0_52 = arith.constant 0 : index
      %c8 = arith.constant 8 : index
      %92 = vector.load %arg12[%c0_52, %c8] : memref<48x16xf32, #tpu.memory_space<vmem>>, vector<16x8xf32>
      tpu.vector_store %arg12[%c0_52, %c8], %91 {strides = array<i32>} : memref<48x16xf32, #tpu.memory_space<vmem>>, vector<16x8xf32>,
      %cst_53 = arith.constant 0.000000e+00 : f32
      %93 = vector.broadcast %cst_53 : f32 to vector<16x4xf32>
      %c16 = arith.constant 16 : index
      %c0_54 = arith.constant 0 : index
      %94 = vector.load %arg12[%c16, %c0_54] : memref<48x16xf32, #tpu.memory_space<vmem>>, vector<16x4xf32>
      tpu.vector_store %arg12[%c16, %c0_54], %93 {strides = array<i32>} : memref<48x16xf32, #tpu.memory_space<vmem>>, vector<16x4xf32>,
      %95 = vector.extract_strided_slice %50 {offsets = [0, 0], sizes = [16, 12], strides = [1, 1]} : vector<16x16xf32> to vector<16x12xf32>
      %c16_55 = arith.constant 16 : index
      %c4 = arith.constant 4 : index
      %96 = vector.load %arg12[%c16_55, %c4] : memref<48x16xf32, #tpu.memory_space<vmem>>, vector<16x12xf32>
      tpu.vector_store %arg12[%c16_55, %c4], %95 {strides = array<i32>} : memref<48x16xf32, #tpu.memory_space<vmem>>, vector<16x12xf32>,
    } else {
    }
    %c0_33 = arith.constant 0 : index
    %c0_34 = arith.constant 0 : index
    %c0_35 = arith.constant 0 : index
    %71 = vector.load %arg7[%c0_33, %c0_34, %c0_35] : memref<1x24x48xf32, #tpu.memory_space<vmem>>, vector<1x24x48xf32>
    %72 = vector.shape_cast %71 : vector<1x24x48xf32> to vector<24x48xf32>
    %c0_36 = arith.constant 0 : index
    %c0_37 = arith.constant 0 : index
    %73 = vector.load %arg12[%c0_36, %c0_37] : memref<48x16xf32, #tpu.memory_space<vmem>>, vector<48x16xf32>
    %cst_38 = arith.constant dense<0.000000e+00> : vector<24x16xf32>
    %74 = tpu.matmul %72, %73, %cst_38 {dimension_numbers = #tpu.dot_dimension_numbers<[1], [0], [0], [1], [0, 0, 1, 1], [], []>} : vector<24x48xf32>, vector<48x16xf32>, vector<24x16xf32> -> vector<24x16xf32>
    %c0_39 = arith.constant 0 : index
    %c0_40 = arith.constant 0 : index
    %c0_41 = arith.constant 0 : index
    %75 = vector.load %arg8[%c0_39, %c0_40, %c0_41] : memref<1x24x1xf32, #tpu.memory_space<vmem>>, vector<1x24x1xf32>
    %76 = vector.shape_cast %75 : vector<1x24x1xf32> to vector<24x1xf32>
    %77 = vector.broadcast %76 : vector<24x1xf32> to vector<24x16xf32>
    %78 = arith.addf %74, %77 : vector<24x16xf32>
    %c0_42 = arith.constant 0 : index
    %c0_43 = arith.constant 0 : index
    %79 = vector.load %arg11[%c0_42, %c0_43] : memref<16x16xf32, #tpu.memory_space<vmem>>, vector<16x16xf32>
    %80 = vector.extract_strided_slice %78 {offsets = [0, 0], sizes = [16, 16], strides = [1, 1]} : vector<24x16xf32> to vector<16x16xf32>
    %81 = arith.addf %79, %80 : vector<16x16xf32>
    %c0_44 = arith.constant 0 : index
    %c0_45 = arith.constant 0 : index
    %82 = vector.load %arg11[%c0_44, %c0_45] : memref<16x16xf32, #tpu.memory_space<vmem>>, vector<16x16xf32>
    tpu.vector_store %arg11[%c0_44, %c0_45], %81 {strides = array<i32>} : memref<16x16xf32, #tpu.memory_space<vmem>>, vector<16x16xf32>,
    %83 = vector.extract_strided_slice %78 {offsets = [16, 0], sizes = [8, 16], strides = [1, 1]} : vector<24x16xf32> to vector<8x16xf32>
    %84 = arith.addf %83, %3 : vector<8x16xf32>
    %c0_46 = arith.constant 0 : index
    %c0_47 = arith.constant 0 : index
    %85 = vector.load %arg10[%c0_46, %c0_47] : memref<8x16xf32, #tpu.memory_space<vmem>>, vector<8x16xf32>
    tpu.vector_store %arg10[%c0_46, %c0_47], %84 {strides = array<i32>} : memref<8x16xf32, #tpu.memory_space<vmem>>, vector<8x16xf32>,
    %c5_i32 = arith.constant 5 : i32
    %86 = arith.cmpi eq, %arg1, %c5_i32 : i32
    %87 = arith.extui %86 : i1 to i32
    %c0_i32_48 = arith.constant 0 : i32
    %88 = arith.cmpi ne, %87, %c0_i32_48 : i32
    scf.if %88 {
      %c0_49 = arith.constant 0 : index
      %c0_50 = arith.constant 0 : index
      %89 = vector.load %arg11[%c0_49, %c0_50] : memref<16x16xf32, #tpu.memory_space<vmem>>, vector<16x16xf32>
      %c0_51 = arith.constant 0 : index
      %c0_52 = arith.constant 0 : index
      %c0_53 = arith.constant 0 : index
      %90 = vector.load %arg9[%c0_51, %c0_52, %c0_53] : memref<1x16x16xf32, #tpu.memory_space<vmem>>, vector<1x16x16xf32>
      %91 = vector.shape_cast %90 : vector<1x16x16xf32> to vector<16x16xf32>
      %92 = vector.shape_cast %89 : vector<16x16xf32> to vector<1x16x16xf32>
      tpu.vector_store %arg9[%c0_51, %c0_52, %c0_53], %92 {strides = array<i32>} : memref<1x16x16xf32, #tpu.memory_space<vmem>>, vector<1x16x16xf32>,
    } else {
    }
    return
  }
  func.func @transform_0(%arg0: i32, %arg1: i32) -> (i32, i32, i32) {
    %c0_i32 = arith.constant 0 : i32
    %c0_i32_0 = arith.constant 0 : i32
    %c0_i32_1 = arith.constant 0 : i32
    return %arg0, %c0_i32, %c0_i32_0 : i32, i32, i32
  }
  func.func @transform_1(%arg0: i32, %arg1: i32) -> (i32, i32) {
    %c0_i32 = arith.constant 0 : i32
    %c0_i32_0 = arith.constant 0 : i32
    %c0_i32_1 = arith.constant 0 : i32
    return %c0_i32, %c0_i32_0 : i32, i32
  }
  func.func @transform_2(%arg0: i32, %arg1: i32) -> (i32, i32, i32) {
    %c0_i32 = arith.constant 0 : i32
    %c0_i32_0 = arith.constant 0 : i32
    %c0_i32_1 = arith.constant 0 : i32
    return %arg1, %c0_i32, %c0_i32_0 : i32, i32, i32
  }
  func.func @transform_3(%arg0: i32, %arg1: i32) -> (i32, i32, i32) {
    %c0_i32 = arith.constant 0 : i32
    %c0_i32_0 = arith.constant 0 : i32
    %c0_i32_1 = arith.constant 0 : i32
    return %arg1, %c0_i32, %c0_i32_0 : i32, i32, i32
  }
  func.func @transform_4(%arg0: i32, %arg1: i32) -> (i32, i32, i32) {
    %c0_i32 = arith.constant 0 : i32
    %c0_i32_0 = arith.constant 0 : i32
    %c0_i32_1 = arith.constant 0 : i32
    return %arg1, %c0_i32, %c0_i32_0 : i32, i32, i32
  }
  func.func @transform_5(%arg0: i32, %arg1: i32) -> (i32, i32, i32) {
    %c0_i32 = arith.constant 0 : i32
    %c0_i32_0 = arith.constant 0 : i32
    %c0_i32_1 = arith.constant 0 : i32
    return %arg1, %c0_i32, %c0_i32_0 : i32, i32, i32
  }
  func.func @transform_6(%arg0: i32, %arg1: i32) -> (i32, i32, i32) {
    %c0_i32 = arith.constant 0 : i32
    %c0_i32_0 = arith.constant 0 : i32
    %c0_i32_1 = arith.constant 0 : i32
    return %arg1, %c0_i32, %c0_i32_0 : i32, i32, i32
  }
  func.func @transform_7(%arg0: i32, %arg1: i32) -> (i32, i32, i32) {
    %c0_i32 = arith.constant 0 : i32
    %c0_i32_0 = arith.constant 0 : i32
    %c0_i32_1 = arith.constant 0 : i32
    return %arg0, %c0_i32, %c0_i32_0 : i32, i32, i32
  }
}

</mosaic_0001>

<bundles_post_ra>
// kernel: tpu_custom_call.1
= control target key start
LH: loop header
LB: loop body
LE: loop exit
PB: predicated region body
PF: predicated region fallthrough
CT: control target
= control target key end

     0   :  { %12 = vsyncpa [#allocation6], 0  ;;  %s1634_s0 = inlined_call_operand.vmem [shape: f32[2,8,16], index: 0, kind: input, shape index: {}]   ;;  %s1635_s1 = inlined_call_operand.vmem [shape: f32[16,16], index: 1, kind: input, shape index: {}]   ;;  %s1636_s2 = inlined_call_operand.vmem [shape: f32[6,16,8], index: 2, kind: input, shape index: {}]   ;;  %s1637_s3 = inlined_call_operand.vmem [shape: f32[6,16,1], index: 3, kind: input, shape index: {}]   ;;  %s1638_s4 = inlined_call_operand.vmem [shape: f32[6,16,1], index: 4, kind: input, shape index: {}]   ;;  %s1639_s5 = inlined_call_operand.vmem [shape: f32[6,24,48], index: 5, kind: input, shape index: {}]   ;;  %s1640_s6 = inlined_call_operand.vmem [shape: f32[6,24,1], index: 6, kind: input, shape index: {}]   ;;  %s1641_s7 = inlined_call_operand.hbm [shape: f32[2,16,16], index: 7, kind: output, shape index: {}]  }
   0x1   :  { %14 = vsyncpa [#allocation6 + $0x1], 0  ;;  %s1382_s24 = smov 0   ;;  %s1384_s25 = smov 0  }
   0x2   :  { %s1386_s26 = smov 0   ;;  %s1388_s27 = smov 0  }
   0x3   :  { %s1390_s28 = smov 0   ;;  %s1392_s29 = smov 0  }
   0x4   :  { %s1394_s30 = smov 0   ;;  %s1396_s8 = smov 0  }
   0x5 LB: > { %1651 = sst [smem:[#allocation8_spill]] %s1295_s24  ;;  %s1024_s9 = sadd.s32 4294967295, %s1323_s8   ;;  %s1323_s8 = sphi %s1396_s8, %s20_s8   ;;  %s1319_s30 = sphi %s1394_s30, %s1675_s30   ;;  %s1315_s29 = sphi %s1392_s29, %s1670_s29   ;;  %s1311_s28 = sphi %s1390_s28, %s1669_s28   ;;  %s1307_s27 = sphi %s1388_s27, %s1668_s27   ;;  %s1303_s26 = sphi %s1386_s26, %s1674_s26   ;;  %s1299_s25 = sphi %s1384_s25, %s1673_s25   ;;  %s1295_s24 = sphi %s1382_s24, %s1672_s24  }
   0x6   : > { %1652 = sst [smem:[#allocation9_spill]] %s1303_s26  ;;  %s1025_s10 = sadd.s32 4294967294, %s1323_s8  }
   0x7   : > { %1653 = sst [smem:[#allocation10_spill]] %s1315_s29  ;;  %s29_s11 = sadd.s32 1, %s1315_s29 }
   0x8   : > { %1654 = sst [smem:[#allocation11_spill]] %s1319_s30  ;;  %p30_p0 = scmp.ge.s32.totalorder %s29_s11, 6 }
   0x9   : > { %1655 = sst [smem:[#allocation12_spill]] %s1323_s8  ;;  %s32_s12 = sadd.s32 1, %s1319_s30 }
   0xa   : > { %p226_p1 = scmp.ne.s32.totalorder %s1303_s26, %s1299_s25  ;;  %p227_p2 = scmp.eq.s32.totalorder %s1024_s9, 11 }
   0xb   : > { %s1677_s11 = smov (%p30_p0, %s29_s11), 0  ;;  %s1679_s12 = smov (!%p30_p0, %s32_s12), %s1319_s30 }
   0xc   : > { %1656 = sst [smem:[#allocation13_spill]] %s1677_s11  ;;  %p1431_p3 = por %p227_p2, %p226_p1 }
   0xd   : > { %p232_p4 = scmp.ne.s32.totalorder %s1299_s25, %s1295_s24  ;;  %p34_p5 = scmp.ge.s32.totalorder %s1679_s12, 2 }
   0xe   : > { %p233_p6 = scmp.eq.s32.totalorder %s1025_s10, 11  ;;  %p1028_p7 = scmp.ge.s32.totalorder %s1323_s8, 1 }
   0xf   : > { %p301_p8 = scmp.lt.s32.totalorder %s1323_s8, 13  ;;  %s1681_s12 = smov (%p34_p5, %s1679_s12), 0 }
  0x10   : > { %1658 = sst [smem:[#allocation14_spill]] %s1681_s12  ;;  %p1441_p9 = por %p233_p6, %p232_p4 }
  0x11   : > { %p302_p10 = pnand %p1028_p7, %p301_p8  ;;  %s213_s15 = ssub.s32 %s1319_s30, %s1681_s12 }
  0x12   : > { %s1659_s14 = scalar_select %p1441_p9, 1, 0 }
  0x13   : > { %s216_s16 = sadd.s32 1, %s1303_s26  ;;  %p214_p11 = scmp.eq.s32.totalorder %s213_s15, 0 }
  0x14   : > { %1660 = sst [smem:[#allocation15_spill]] %s1659_s14  ;;  %305 = sbr.rel (%p302_p10) target bundleno = 1173 (0x495), region = 48 }
  0x15   : > { %s1449_s17 = scalar_select %p214_p11, %s1303_s26, %s216_s16  }
  0x16   : > { %s1647_s18 = sand.u32 (!%p302_p10), 1, %s1299_s25   ;;  %p357_p12 = scmp.lt.s32.totalorder (!%p302_p10), %s1311_s28, 1 }
  0x17   : > { %1661 = sst [smem:[#allocation16_spill]] %s1449_s17  ;;  %s1029_s19 = sshll.u32 (!%p302_p10), %s1647_s18, 4 }
  0x18   : > { %p361_p13 = scmp.lt.s32.totalorder (!%p302_p10), %s1307_s27, 5  ;;  %s1482_s16 = scalar_lea.vmem (!%p302_p10), [#allocation5], %s1029_s19 }
  0x19   : > { %p1039_p0 = scmp.ne.s32.totalorder (!%p302_p10), %s1307_s27, 0 }
  0x1b   : > { %s358_s20 = scalar_select %p357_p12, %s1311_s28, 1 }
  0x1c   : > { %s362_s21 = scalar_select %p361_p13, %s1307_s27, 5 }
  0x1d   : > { %s1030_s22 = sshll.u32 %s358_s20, 3  ;;  %389 = sbr.rel (%p1039_p0) target bundleno = 36 (0x24), region = 52  ;;  %vm391_vm0 = vcmask (!%p1039_p0), 130048   ;;  %v1325_v1 = vmov (!%p1039_p0), 0.0  }
  0x1e   : > { %s360_s10 = scalar_lea.vmem %s1634_s0, %s1030_s22  ;;  %s1058_s15 = sshll.u32 %s362_s21, 4  ;;  %393 = vst.msk [vmem:[#allocation3] sm:$0xff] (!%p1039_p0), %vm391_vm0, %v1325_v1  ;;  %394 = vst.msk [vmem:[#allocation3 + $0x8] sm:$0xff] (!%p1039_p0), %vm391_vm0, %v1325_v1 }
  0x1f   : > { %s365_s11 = scalar_lea.vmem %s1636_s2, %s1058_s15  ;;  %s370_s17 = scalar_lea.vmem %s1637_s3, %s1058_s15  ;;  %v390_v0 = vld [vmem:[%s360_s10] sm:$0xff] (!%p1039_p0) }
  0x20   : > { %s1470_s18 = scalar_lea.vmem %s1638_s4, %s1058_s15  ;;  %s1128_s24 = smul.u32 24, %s362_s21  ;;  %392 = vst.msk [vmem:[#allocation2] sm:$0xff] (!%p1039_p0), %vm391_vm0, %v390_v0 }
  0x22   : > { %s1475_s23 = scalar_lea.vmem %s1639_s5, %s1128_s24  ;;  %s1480_s12 = scalar_lea.vmem %s1640_s6, %s1128_s24 }
  0x24 PF: > { %v396_v3 = vld [vmem:[%s365_s11] sm:$0xff]  ;;  %vm410_vm1 = vcmask 64512   ;;  %v397_v4 = vld [vmem:[%s365_s11 + $0x8] sm:$0xff]  ;;  %v1326_v6 = vmov 0   ;;  %v1327_v10 = vmov 0.0|0.0   ;;  %vm1328_vm2 = vmmov 0  }
  0x25   : > { %1079 = vmatprep.mubr.msk.f32.mxu0 %vm410_vm1, %v396_v3  ;;  %v398_v5 = vld [vmem:[%s370_s17] sm:$0xff]  ;;  %1217 = vset.pattern.permute.xlu0 %v1326_v6  ;;  %v399_v7 = vld [vmem:[%s370_s17 + $0x8] sm:$0xff]  ;;  %v1329_v12 = vmov 0.0   ;;  %vm492_vm3 = vcmask 130048   ;;  %vm513_vm4 = vcmask 1040384   ;;  %s643_s8 = ssub.s32 0, %s1307_s27  ;;  %v590_v42 = vlaneseq }
  0x26   : > { %402 = vperm.xlu0 %1217, %v398_v5   ;;  %1218 = vset.pattern.permute.xlu1 %v1326_v6  ;;  %v515_v8 = vld [vmem:[%s1635_s1] sm:$0xff]  ;;  %v516_v9 = vld [vmem:[%s1635_s1 + $0x8] sm:$0xff]  ;;  %s1043_s11 = smin.u32 %s1307_s27, %s643_s8  ;;  %p642_p1 = scmp.lt.s32.totalorder %s1307_s27, 0 }
  0x27   : > { %v1485_v2 = vld [vmem:[#allocation2] sm:$0xff]  ;;  %1110 = vmatprep.subr.bf16.mxu1 %v1327_v10  ;;  %v1111_v11 = vpack.c.bf16 %v516_v9, %v515_v8  ;;  %1086 = vmatprep.mubr.msk.f32.mxu1 %vm1328_vm2, %v1329_v12  ;;  %v627_v14 = vld [vmem:[%s1470_s18 + $0x8] sm:$0xff]  ;;  %1219 = sdivrem.u32 %s1043_s11, 3  ;;  %v591_v43 = vand.u32 127, %v590_v42  ;;  %v615_v61 = vshrl.u32 %v590_v42, 7 }
  0x28   : > { %1077 = vmatprep.subr.mxu0 %v1485_v2  ;;  %v626_v13 = vld [vmem:[%s1470_s18] sm:$0xff] }
  0x29   : > { %1078 = vmatpush3.msra.mxu0 %v1485_v2  ;;  %1112 = vmatpush3.bf16.msra.mxu1 %v1111_v11  ;;  %v592_v44 = vadd.s32 1, %v591_v43  ;;  %v616_v62 = vsub.s32 0, %v615_v61  ;;  %v622_v0 = vsub.s32 1, %v615_v61 }
  0x2a   : > { %1080 = vmatmul.mubr.msk.f32.vlgmr.msra.gmra.mrb[0].mxu0 %vm410_vm1, %v397_v4  ;;  %407 = vperm.xlu0 %1217, %v399_v7  }
  0x2b   : > { %630 = vperm.xlu1 %1218, %v626_v13   ;;  %v593_v45 = vcvt.s32.f32 %v592_v44 }
  0x2d   : > { %v594_v46 = vmul.f32 16.0, %v593_v45 }
  0x2f   : > { %635 = vperm.xlu1 %1218, %v627_v14   ;;  %1221 = vrcp.f32 %v594_v46 }
  0x30   : > { %s1220_s14 = spop.drf %1219 }
  0x31   : > { %s647_s17 = ssub.s32 0, %s1220_s14 }
  0x32   : > { %s1683_s17 = smov (!%p642_p1, %s647_s17), %s1220_s14 }
  0x33   : > { %p1045_p2 = scmp.lt.s32.totalorder %s1683_s17, 0  ;;  %s653_s18 = sadd.s32 3, %s1683_s17 }
  0x35   : > { %s1685_s18 = smov (!%p1045_p2, %s653_s18), %s1683_s17 }
  0x36   : > { %p1046_p4 = scmp.ne.s32.totalorder %s1685_s18, 0 }
  0x37   : > { %vm673_vm7 = vcmask (!%p1046_p4), 7168   ;;  %s1330_s19 = smov (!%p1046_p4), 1   ;;  %s1331_s21 = smov (!%p1046_p4), 2   ;;  %vm659_vm8 = vcmask (!%p1046_p4), 15360   ;;  %vm682_vm9 = vcmask (!%p1046_p4), 130056   ;;  %vm670_vm10 = vcmask (!%p1046_p4), 130064  }
  0x39   : > { %v1222_v47 = vpop.eup %1221 }
  0xa5   : > { %v403_v15 = vpop.permute.xlu0 %402 }
  0xa9   : > { %v408_v16 = vpop.permute.xlu0 %407 }
  0xaa   : > { %v631_v1 = vpop.permute.xlu1 %630 }
  0xae   : > { %v636_v11 = vpop.permute.xlu1 %635 }
  0xfd   : > { %v1081_v17 = vpop.f32.mrb[0].mxu0 }
  0xfe   : > { %v1504_v18 = vadd.f32 %v1081_v17, %v408_v16  ;;  %v483_v19 = vpop.f32.mrb[1].mxu0 }
  0xff   : > { %v1506_v20 = vadd.f32 %v483_v19, %v403_v15  ;;  %v1332_v15 = vmov (!%p1046_p4), 0.0  }
 0x100   : > { %v494_v21 = vsel %vm492_vm3, %v1504_v18, 0.0  ;;  %v503_v22 = vmul.f32 %v1504_v18, %v1504_v18  ;;  %674 = vst.msk [vmem:[#allocation4 + $0x10] sm:$0xff] (!%p1046_p4), %vm673_vm7, %v1332_v15  ;;  %675 = vst.msk [vmem:[#allocation4 + $0x18] sm:$0xff] (!%p1046_p4), %vm673_vm7, %v1332_v15 }
 0x101   : > { %v493_v23 = vsel %vm492_vm3, %v1506_v20, 0.0  ;;  %v502_v24 = vmul.f32 %v1506_v20, %v1506_v20  ;;  %660 = vst.msk [vmem:[#allocation4] sm:$0xff] (!%p1046_p4), %vm659_vm8, %v1332_v15  ;;  %661 = vst.msk [vmem:[#allocation4 + $0x8] sm:$0xff] (!%p1046_p4), %vm659_vm8, %v1332_v15 }
 0x102   : > { %v505_v25 = vsel %vm492_vm3, %v503_v22, 0.0  ;;  %v495_v26 = vadd.f32 %v494_v21, %v493_v23 }
 0x103   : > { %v504_v27 = vsel %vm492_vm3, %v502_v24, 0.0 }
 0x104   : > { %v496_v28 = vrot.slane %v495_v26, 4  ;;  %v506_v29 = vadd.f32 %v505_v25, %v504_v27 }
 0x106   : > { %v497_v30 = vadd.f32 %v496_v28, %v495_v26  ;;  %v507_v31 = vrot.slane %v506_v29, 4 }
 0x108   : > { %v498_v32 = vrot.slane %v497_v30, 2  ;;  %v508_v33 = vadd.f32 %v507_v31, %v506_v29 }
 0x10a   : > { %v499_v34 = vadd.f32 %v498_v32, %v497_v30  ;;  %v509_v35 = vrot.slane %v508_v33, 2 }
 0x10c   : > { %v500_v36 = vrot.slane %v499_v34, 1  ;;  %v510_v37 = vadd.f32 %v509_v35, %v508_v33 }
 0x10e   : > { %v511_v38 = vrot.slane %v510_v37, 1  ;;  %v501_v39 = vadd.f32 %v500_v36, %v499_v34 }
 0x110   : > { %v512_v40 = vadd.f32 %v511_v38, %v510_v37 }
 0x112   : > { %v514_v41 = vsel %vm513_vm4, %v501_v39, %v512_v40 }
 0x113   : > { %1087 = vmatmul.mubr.msk.f32.vlgmr.msra.gmra.mrb[0].mxu1 %vm492_vm3, %v514_v41 }
 0x1e6   : > { %v586_v48 = vpop.f32.mrb[0].mxu1 }
 0x1e7   : > { %v597_v49 = vmul.f32 %v1222_v47, %v586_v48  ;;  %v1088_v50 = vpop.f32.mrb[1].mxu1 }
 0x1e9   : > { %v598_v51 = vmul.f32 %v597_v49, %v597_v49  ;;  %v617_v63 = vrot.slane %v597_v49, %v616_v62 }
 0x1eb   : > { %v600_v52 = vrot.slane %v598_v51, 7  ;;  %v618_v4 = vsub.f32 %v1506_v20, %v617_v63  ;;  %v619_v7 = vsub.f32 %v1504_v18, %v617_v63 }
 0x1ed   : > { %v602_v53 = vsub.f32 %v597_v49, %v600_v52 }
 0x1ef   : > { %v603_v54 = vmax.f32 %v602_v53, 0.0 }
 0x1f1   : > { %1223 = vrsqrt.f32 %v603_v54  ;;  %vm606_vm5 = vcmp.eq.f32.partialorder %v603_v54, inf  ;;  %v609_v57 = vand.u32 2147483648, %v603_v54  ;;  %vm608_vm6 = vcmp.eq.f32.partialorder %v603_v54, 0.0 }
 0x1fb   : > { %v1224_v55 = vpop.eup %1223 }
 0x1fc   : > { %v605_v56 = vmul.f32 %v1224_v55, %v603_v54 }
 0x1fe   : > { %v607_v58 = vsel %vm606_vm5, %v603_v54, %v605_v56 }
 0x1ff   : > { %v610_v59 = vsel %vm608_vm6, %v609_v57, %v607_v58 }
 0x200   : > { %v611_v60 = vadd.f32 1e-08, %v610_v59 }
 0x202   : > { %1225 = vrcp.f32 %v611_v60 }
 0x20c   : > { %v1226_v3 = vpop.eup %1225 }
 0x20d   : > { %v623_v5 = vrot.slane %v1226_v3, %v622_v0  ;;  %658 = sbr.rel (%p1046_p4) target bundleno = 652 (0x28c), region = 56 }
 0x20f   : > { %v624_v8 = vmul.f32 %v623_v5, %v618_v4  ;;  %v625_v9 = vmul.f32 %v623_v5, %v619_v7 }
 0x211   : > { %v638_v13 = vadd.f32 %v631_v1, %v624_v8  ;;  %v1526_v14 = vadd.f32 %v636_v11, %v625_v9 }
 0x213   : > { %640 = vst.msk [vmem:[#allocation4 + $0x20] sm:$0xff] %vm492_vm3, %v638_v13  ;;  %641 = vst.msk [vmem:[#allocation4 + $0x28] sm:$0xff] %vm492_vm3, %v1526_v14  ;;  %676 = vrot.lane.b32.xlu1 (!%p1046_p4), %v638_v13, %s1330_s19  ;;  %664 = vrot.lane.b32.xlu0 (!%p1046_p4), %v638_v13, %s1331_s21 }
 0x217   : > { %678 = vrot.lane.b32.xlu1 %v1526_v14, %s1330_s19  ;;  %666 = vrot.lane.b32.xlu0 %v1526_v14, %s1331_s21 }
 0x285   : > { %v677_v16 = vpop.permute.xlu1 %676  ;;  %v665_v17 = vpop.permute.xlu0 %664 }
 0x286   : > { %683 = vst.msk [vmem:[#allocation4 + $0x10] sm:$0xff] %vm682_vm9, %v677_v16 }
 0x287   : > { %671 = vst.msk [vmem:[#allocation4] sm:$0xff] %vm670_vm10, %v665_v17 }
 0x289   : > { %v679_v18 = vpop.permute.xlu1 %678  ;;  %v667_v19 = vpop.permute.xlu0 %666 }
 0x28a   : > { %684 = vst.msk [vmem:[#allocation4 + $0x18] sm:$0xff] %vm682_vm9, %v679_v18 }
 0x28b   : > { %672 = vst.msk [vmem:[#allocation4 + $0x8] sm:$0xff] %vm670_vm10, %v667_v19 }
 0x28c PF: > { %p1047_p5 = scmp.ne.s32.totalorder %s1685_s18, 1 }
 0x28d   : > { %vm703_vm11 = vcmask (!%p1047_p5), 15360   ;;  %s1333_s10 = smov (!%p1047_p5), 2   ;;  %s1334_s15 = smov (!%p1047_p5), 4   ;;  %v1335_v20 = vmov (!%p1047_p5), 0.0   ;;  %vm689_vm12 = vcmask (!%p1047_p5), 31744   ;;  %vm712_vm13 = vcmask (!%p1047_p5), 130064  }
 0x28e   : > { %688 = sbr.rel (%p1047_p5) target bundleno = 775 (0x307), region = 60  ;;  %706 = vrot.lane.b32.xlu1 (!%p1047_p5), %v638_v13, %s1333_s10  ;;  %694 = vrot.lane.b32.xlu0 (!%p1047_p5), %v638_v13, %s1334_s15  ;;  %704 = vst.msk [vmem:[#allocation4 + $0x10] sm:$0xff] (!%p1047_p5), %vm703_vm11, %v1335_v20  ;;  %705 = vst.msk [vmem:[#allocation4 + $0x18] sm:$0xff] (!%p1047_p5), %vm703_vm11, %v1335_v20  ;;  %vm700_vm14 = vcmask (!%p1047_p5), 130080  }
 0x28f   : > { %690 = vst.msk [vmem:[#allocation4] sm:$0xff] (!%p1047_p5), %vm689_vm12, %v1335_v20  ;;  %691 = vst.msk [vmem:[#allocation4 + $0x8] sm:$0xff] (!%p1047_p5), %vm689_vm12, %v1335_v20 }
 0x292   : > { %708 = vrot.lane.b32.xlu1 (!%p1047_p5), %v1526_v14, %s1333_s10  ;;  %696 = vrot.lane.b32.xlu0 (!%p1047_p5), %v1526_v14, %s1334_s15 }
 0x300   : > { %v707_v21 = vpop.permute.xlu1 %706  ;;  %v695_v22 = vpop.permute.xlu0 %694 }
 0x301   : > { %713 = vst.msk [vmem:[#allocation4 + $0x10] sm:$0xff] %vm712_vm13, %v707_v21 }
 0x302   : > { %701 = vst.msk [vmem:[#allocation4] sm:$0xff] %vm700_vm14, %v695_v22 }
 0x304   : > { %v709_v23 = vpop.permute.xlu1 %708  ;;  %v697_v24 = vpop.permute.xlu0 %696 }
 0x305   : > { %714 = vst.msk [vmem:[#allocation4 + $0x18] sm:$0xff] %vm712_vm13, %v709_v23 }
 0x306   : > { %702 = vst.msk [vmem:[#allocation4 + $0x8] sm:$0xff] %vm700_vm14, %v697_v24 }
 0x307 PF: > { %p1048_p6 = scmp.ne.s32.totalorder %s1685_s18, 2 }
 0x308   : > { %vm732_vm15 = vcmask (!%p1048_p6), 31744   ;;  %s1336_s20 = smov (!%p1048_p6), 4   ;;  %s1337_s22 = smov (!%p1048_p6), 8   ;;  %v1338_v25 = vmov (!%p1048_p6), 0.0   ;;  %vm741_vm0 = vcmask (!%p1048_p6), 130080   ;;  %vm729_vm4 = vcmask (!%p1048_p6), 130112  }
 0x309   : > { %718 = sbr.rel (%p1048_p6) target bundleno = 898 (0x382), region = 64  ;;  %735 = vrot.lane.b32.xlu1 (!%p1048_p6), %v638_v13, %s1336_s20  ;;  %723 = vrot.lane.b32.xlu0 (!%p1048_p6), %v638_v13, %s1337_s22  ;;  %733 = vst.msk [vmem:[#allocation4 + $0x10] sm:$0xff] (!%p1048_p6), %vm732_vm15, %v1338_v25  ;;  %734 = vst.msk [vmem:[#allocation4 + $0x18] sm:$0xff] (!%p1048_p6), %vm732_vm15, %v1338_v25 }
 0x30a   : > { %719 = vst.msk [vmem:[#allocation4] sm:$0xff] (!%p1048_p6), %vm410_vm1, %v1338_v25  ;;  %720 = vst.msk [vmem:[#allocation4 + $0x8] sm:$0xff] (!%p1048_p6), %vm410_vm1, %v1338_v25 }
 0x30d   : > { %737 = vrot.lane.b32.xlu1 (!%p1048_p6), %v1526_v14, %s1336_s20  ;;  %725 = vrot.lane.b32.xlu0 (!%p1048_p6), %v1526_v14, %s1337_s22 }
 0x37b   : > { %v736_v26 = vpop.permute.xlu1 %735  ;;  %v724_v27 = vpop.permute.xlu0 %723 }
 0x37c   : > { %742 = vst.msk [vmem:[#allocation4 + $0x10] sm:$0xff] %vm741_vm0, %v736_v26 }
 0x37d   : > { %730 = vst.msk [vmem:[#allocation4] sm:$0xff] %vm729_vm4, %v724_v27 }
 0x37f   : > { %v738_v28 = vpop.permute.xlu1 %737  ;;  %v726_v29 = vpop.permute.xlu0 %725 }
 0x380   : > { %743 = vst.msk [vmem:[#allocation4 + $0x18] sm:$0xff] %vm741_vm0, %v738_v28 }
 0x381   : > { %731 = vst.msk [vmem:[#allocation4 + $0x8] sm:$0xff] %vm729_vm4, %v726_v29 }
 0x382 PF: > { %1113 = vmatprep.subr.bf16.mxu0 %v1327_v10  ;;  %1122 = vmatprep.subr.bf16.mxu1 %v1327_v10  ;;  %v753_v36 = vld [vmem:[%s1480_s12] sm:$0xff]  ;;  %v755_v37 = vld [vmem:[%s1480_s12 + $0x10] sm:$0xff]  ;;  %v751_v38 = vld [vmem:[#allocation4 + $0x20] sm:$0xff]  ;;  %vm771_vm1 = vcmask 392192   ;;  %p1052_p7 = scmp.ne.s32.totalorder %s1307_s27, 5 }
 0x383   : > { %v749_v32 = vld [vmem:[#allocation4 + $0x10] sm:$0xff]  ;;  %1101 = vmatprep.mubr.msk.f32.mxu0 %vm1328_vm2, %v1329_v12  ;;  %1107 = vmatprep.mubr.msk.f32.mxu1 %vm1328_vm2, %v1329_v12  ;;  %v752_v39 = vld [vmem:[#allocation4 + $0x28] sm:$0xff]  ;;  %v746_v42 = vld [vmem:[%s1475_s23 + $0x10] sm:$0xff] }
 0x384   : > { %v747_v30 = vld [vmem:[#allocation4] sm:$0xff]  ;;  %1227 = vset.pattern.permute.xlu0 %v1326_v6  ;;  %1228 = vset.pattern.permute.xlu1 %v1326_v6  ;;  %v754_v40 = vld [vmem:[%s1480_s12 + $0x8] sm:$0xff]  ;;  %v1120_v6 = vpack.c.bf16 %v752_v39, %v751_v38  ;;  %v744_v41 = vld [vmem:[%s1475_s23] sm:$0xff] }
 0x385   : > { %758 = vperm.xlu0 %1227, %v753_v36   ;;  %768 = vperm.xlu1 %1228, %v755_v37   ;;  %v745_v43 = vld [vmem:[%s1475_s23 + $0x8] sm:$0xff]  ;;  %v862_v56 = vld [vmem:[#allocation3 + $0x8] sm:$0xff] }
 0x386   : > { %v861_v47 = vld [vmem:[#allocation3] sm:$0xff] }
 0x387   : > { %v750_v34 = vld [vmem:[#allocation4 + $0x18] sm:$0xff] }
 0x388   : > { %v748_v31 = vld [vmem:[#allocation4 + $0x8] sm:$0xff]  ;;  %v1117_v35 = vpack.c.bf16 %v750_v34, %v749_v32 }
 0x389   : > { %v1114_v33 = vpack.c.bf16 %v748_v31, %v747_v30  ;;  %763 = vperm.xlu0 %1227, %v754_v40  }
 0x38b   : > { %1115 = vmatpush3.bf16.msra.mxu0 %v1114_v33  ;;  %1125 = vmatpush3.bf16.msra.mxu1 %v1114_v33 }
 0x38c   : > { %1116 = vmatprep.subr.bf16.mxu0 %v1327_v10  ;;  %1123 = vmatprep.subr.bf16.mxu1 %v1327_v10 }
 0x38f   : > { %1118 = vmatpush3.bf16.msra.mxu0 %v1117_v35  ;;  %1126 = vmatpush3.bf16.msra.mxu1 %v1117_v35 }
 0x390   : > { %1119 = vmatprep.subr.bf16.mxu0 %v1327_v10  ;;  %1124 = vmatprep.subr.bf16.mxu1 %v1327_v10 }
 0x393   : > { %1121 = vmatpush3.bf16.msra.mxu0 %v1120_v6  ;;  %1127 = vmatpush3.bf16.msra.mxu1 %v1120_v6 }
 0x396   : > { %1102 = vmatmul.mubr.msk.f32.vlgmr.msra.gmra.mrb[2].mxu0 %vm771_vm1, %v744_v41  ;;  %1108 = vmatmul.mubr.msk.f32.vlgmr.msra.gmra.mrb[2].mxu1 %vm771_vm1, %v746_v42 }
 0x397   : > { %1104 = vmatprep.mubr.msk.f32.mxu0 %vm1328_vm2, %v1329_v12 }
 0x39a   : > { %1105 = vmatmul.mubr.msk.f32.gmra.mrb[4].mxu0 %vm771_vm1, %v745_v43 }
 0x404   : > { %v759_v44 = vpop.permute.xlu0 %758  ;;  %v769_v45 = vpop.permute.xlu1 %768 }
 0x408   : > { %v764_v54 = vpop.permute.xlu0 %763 }
 0x469   : > { %v847_v46 = vpop.f32.mrb[2].mxu0  ;;  %v857_v48 = vpop.f32.mrb[2].mxu1 }
 0x46a   : > { %v848_v49 = vadd.f32 %v847_v46, %v759_v44  ;;  %v1103_v10 = vpop.f32.mrb[3].mxu0  ;;  %v858_v50 = vadd.f32 %v857_v48, %v769_v45  ;;  %v1109_v51 = vpop.f32.mrb[3].mxu1 }
 0x46c   : > { %v863_v52 = vadd.f32 %v861_v47, %v848_v49  ;;  %v867_v53 = vadd.f32 %v858_v50, %v1485_v2  ;;  %872 = sbr.rel (%p1052_p7) target bundleno = 1147 (0x47b), region = 68 }
 0x46d   : > { %v852_v55 = vpop.f32.mrb[4].mxu0 }
 0x46e   : > { %865 = vst.msk [vmem:[#allocation3] sm:$0xff] %vm492_vm3, %v863_v52  ;;  %868 = vst.msk [vmem:[#allocation2] sm:$0xff] %vm492_vm3, %v867_v53  ;;  %v853_v12 = vadd.f32 %v852_v55, %v764_v54  ;;  %v1106_v57 = vpop.f32.mrb[5].mxu0 }
 0x470   : > { %v864_v58 = vadd.f32 %v862_v56, %v853_v12 }
 0x472   : > { %866 = vst.msk [vmem:[#allocation3 + $0x8] sm:$0xff] %vm492_vm3, %v864_v58 }
 0x475   : > { %v873_v59 = vld [vmem:[#allocation3] sm:$0xff] }
 0x476   : > { %875 = vst.msk [vmem:[%s1482_s16] sm:$0xff] %vm492_vm3, %v873_v59 }
 0x479   : > { %v874_v60 = vld [vmem:[#allocation3 + $0x8] sm:$0xff] }
 0x47a   : > { %876 = vst.msk [vmem:[%s1482_s16 + $0x8] sm:$0xff] %vm492_vm3, %v874_v60 }
 0x47b PF: > { %s1061_s23 = sshll.u32 %s1311_s28, 8  ;;  %s891_s27 = sshll.u32 %s1482_s16, 4  ;;  %s1578_s27 = int_to_ptr.vmem [resolvable:$true] %s891_s27 }
 0x47c   : > { %s1575_s24 = scalar_lea.hbm %s1641_s7, %s1061_s23  ;;  %s1662_s26 = sand.u32 1, %s1299_s25  }
 0x47d   : > { %s1582_s29 = scalar_lea.sflag [#allocation6], %s1662_s26  ;;  %s1229_s30 = scalar_lea.vmem %s1578_s27, 256 }
 0x47e   : > { %p1230_p8 = scmp.ne.s32.totalorder %s1578_s27, %s1229_s30  ;;  %s1339_s28 = smov [#allocation5]  }
 0x47f   : > { %s1233_s8 = sshll.u32 %s1339_s28, 4  ;;  %s1234_s8 = int_to_ptr.vmem [resolvable:$false] %s1233_s8 }
 0x480   : > { %p1231_p10 = pnand %p1230_p8, %p1431_p3  ;;  %s1235_s11 = scalar_lea.vmem %s1234_s8, 512 }
 0x481   : > { %p1236_p12 = scmp.lt.s32.totalorder %s1578_s27, %s1234_s8  ;;  %p1237_p13 = scmp.lt.s32.totalorder %s1235_s11, %s1229_s30 }
 0x482   : > { %p1232_p11 = pneg %p1231_p10 }
 0x483   : > { %p1238_p0 = por %p1237_p13, %p1236_p12 }
 0x485   : > { %p1239_p1 = pnand %p1238_p0, %p1232_p11 }
 0x487   : > { %1242 = shalt.err (!%p1239_p1)
}
 0x488   : > { %s1243_s16 = scalar_lea.hbm %s1575_s24, 256  ;;  %s1247_s18 = scalar_lea.hbm %s1641_s7, 512 }
 0x489   : > { %p1244_p2 = scmp.ne.s32.totalorder %s1575_s24, %s1243_s16  ;;  %p1248_p6 = scmp.lt.u32.totalorder %s1575_s24, %s1641_s7 }
 0x48a   : > { %p1249_p7 = scmp.lt.u32.totalorder %s1247_s18, %s1243_s16  ;;  %p1251_p10 = scmp.lt.u32.totalorder %s1243_s16, %s1575_s24 }
 0x48b   : > { %p1245_p4 = pnand %p1244_p2, %p1431_p3 }
 0x48c   : > { %p1250_p8 = por %p1249_p7, %p1248_p6 }
 0x48d   : > { %p1246_p5 = pneg %p1245_p4 }
 0x48e   : > { %p1252_p11 = por %p1251_p10, %p1250_p8 }
 0x490   : > { %p1253_p12 = pnand %p1252_p11, %p1246_p5 }
 0x492   : > { %1256 = shalt.err (!%p1253_p12)
}
 0x493   : > { %s1340_s10 = smov 128   ;;  %s1341_s15 = smov 8  }
 0x494   : > { %1129 = dma.vmem_to_hbm [thread:$0]  (%p1431_p3), %s1578_s27, 256, %s1575_s24, %s1582_s29, %s1340_s10, %s1340_s10, %s1341_s15  }
 0x495 PF: > { %s1663_s20 = sld [smem:[#allocation12_spill]]  ;;  %s1664_s22 = sld [smem:[#allocation8_spill]] }
 0x49b   : > { %p1135_p13 = scmp.ge.s32.totalorder %s1663_s20, 2  ;;  %s906_s9 = sand.u32 1, %s1664_s22  }
 0x49c   : > { %s907_s12 = scalar_lea.sflag [#allocation6], %s906_s9 }
 0x49d   : > { %p1132_p0 = pnand %p1135_p13, %p1441_p9 }
 0x49f   : > { %1290 = dma.done.wait (!%p1132_p0), %s907_s12, 256  }
 0x4a0   : > { %1292 = vsyncadd (!%p1132_p0), %s907_s12, 4294967040  ;;  %s20_s8 = sadd.s32 1, %s1663_s20   ;;  %s1666_s26 = sld [smem:[#allocation9_spill]] }
 0x4a1   : > { %p17_p1 = scmp.ge.s32.totalorder %s20_s8, 14   ;;  %s1667_s30 = sld [smem:[#allocation16_spill]] }
 0x4a2   : > { %s1668_s27 = sld [smem:[#allocation10_spill]]  ;;  %s1669_s28 = sld [smem:[#allocation11_spill]] }
 0x4a3   : > { %s1670_s29 = sld [smem:[#allocation13_spill]]  ;;  %s1671_s13 = sld [smem:[#allocation14_spill]] }
 0x4a4   : > { %s1672_s24 = smov %s1299_s25  ;;  %19 = sbr.rel (!%p17_p1) target bundleno = 5 (0x5), region = 118 }
 0x4a6   : > { %s1673_s25 = smov %s1666_s26 }
 0x4a7   : > { %s1674_s26 = smov %s1667_s30 }
 0x4a9   : > { %s1675_s30 = smov %s1671_s13 }
 0x4ab   :  { %912 = vsyncpa [#allocation6], 1 }
 0x4ac   :  { %914 = vsyncpa [#allocation6 + $0x1], 1 }

</bundles_post_ra>
